<compile_context>
chip_gen: v6e
topology: v6e:2x2x1
jax: 0.10.0
libtpu: 0.0.40
codegen_flags: <defaults>
</compile_context>

<pallas_src>
import functools
import math

import jax
import jax.numpy as jnp
import numpy as np
from jax.experimental import pallas as pl
from jax.experimental.pallas import tpu as pltpu


def _round_up(v, m):
    return ((v + m - 1) // m) * m


# ----------------------------------------------------------------------------
# Kernel 1: pixel normalization (row-block tiled, small per-channel constants)
# ----------------------------------------------------------------------------
def _normalize_kernel(x_ref, mean_ref, inv_std_ref, o_ref):
    # x: (row_block, W*C); mean / inv_std: (1, W*C) broadcast over rows.
    o_ref[...] = (x_ref[...] - mean_ref[...]) * inv_std_ref[...]


def normalize_image(x, pixel_mean, pixel_std):
    """(x - mean) / std on NHWC images.

    The image is viewed as (N*H, W*C): row blocks (multiples of 8 sublanes) are
    streamed through a parallel grid so DMA overlaps compute, and the per-channel
    constants are a single (1, W*C) row instead of image-sized arrays.
    """
    N, H, W, C = x.shape
    R, Lc = N * H, W * C
    x2 = x.reshape(R, Lc)
    mean_row = jnp.tile(pixel_mean.astype(jnp.float32), W).reshape(1, Lc)
    inv_row = jnp.tile((1.0 / pixel_std).astype(jnp.float32), W).reshape(1, Lc)

    row_block = R
    for cand in (512, 256, 128, 64, 32, 16, 8):  # sublane-aligned row tiles
        if R % cand == 0:
            row_block = cand
            break

    out = pl.pallas_call(
        _normalize_kernel,
        out_shape=jax.ShapeDtypeStruct((R, Lc), jnp.float32),
        grid=(R // row_block,),
        in_specs=[pl.BlockSpec((row_block, Lc), lambda i: (i, 0)),
                  pl.BlockSpec((1, Lc), lambda i: (0, 0)),
                  pl.BlockSpec((1, Lc), lambda i: (0, 0))],
        out_specs=pl.BlockSpec((row_block, Lc), lambda i: (i, 0)),
        compiler_params=pltpu.CompilerParams(dimension_semantics=("parallel",)),
    )(x2, mean_row, inv_row)
    return out.reshape(N, H, W, C)


# ----------------------------------------------------------------------------
# Kernel 2: fused RetinaHead level (both branches, H-strip tiled, tap-accumulate)
# ----------------------------------------------------------------------------
def _fused_level_head_kernel(x_ref, wsc_ref, bsc_ref, wfc_ref, bfc_ref,
                             wsb_ref, bsb_ref, wfb_ref, bfb_ref,
                             cls_ref, box_ref, act_ref,
                             *, S, S_ext, W, Cp, NC, E, H):
    """One (image, H-strip) through both RetinaHead branches.

    x_ref   : (1, S_ext, W, Cp) bf16  input strip rows [s*S-E, s*S+S+E), zero-padded
                                      outside the image, channels padded to Cp
    wsc/wsb : (NC, 9, Cp, Cp)   bf16  subnet conv weights, one (Cp, Cp) matrix per tap
    bsc/bsb : (NC, 1, Cp)       f32   subnet biases
    wfc/wfb : (9, Cp, Cout_pad) bf16  cls_score / bbox_pred weights per tap
    bfc/bfb : (1, Cout_pad)     f32   cls_score / bbox_pred biases
    cls_ref : (1, S*W, Ccls_pad) f32  lane-dense strip output (cls branch)
    box_ref : (1, S*W, Cbox_pad) f32  lane-dense strip output (box branch)
    act_ref : (S_ext+2, W+2, Cp) bf16 activation scratch with a 1-wide zero halo ring
    """
    s = pl.program_id(1)

    # Zero only the 1-wide halo ring; the interior is fully rewritten below.
    zrow = jnp.zeros((1, W + 2, Cp), jnp.bfloat16)
    zcol = jnp.zeros((S_ext + 2, 1, Cp), jnp.bfloat16)
    act_ref[0:1, :, :] = zrow
    act_ref[S_ext + 1:S_ext + 2, :, :] = zrow
    act_ref[:, 0:1, :] = zcol
    act_ref[:, W + 1:W + 2, :] = zcol

    # Extended-strip rows that fall outside the image must be forced back to zero
    # after every intermediate conv so they keep acting as SAME zero padding.
    e_row = jax.lax.broadcasted_iota(jnp.int32, (S_ext, W), 0)
    g_row = s * S - E + e_row
    in_image = jnp.logical_and(g_row >= 0, g_row < H)[:, :, None]  # (S_ext, W, 1)

    def conv3x3(row0, rows, w_tap):
        """Sum of 9 tap matmuls: (rows*W, Cp) @ (Cp, Cout), f32 accumulation."""
        acc = None
        for dh in range(3):
            for dw in range(3):
                patch = act_ref[row0 + dh:row0 + dh + rows, dw:dw + W, :]
                patch = patch.reshape(rows * W, Cp)
                part = jnp.dot(patch, w_tap(dh * 3 + dw),
                               preferred_element_type=jnp.float32)
                acc = part if acc is None else acc + part
        return acc

    def run_branch(w_sub_ref, b_sub_ref, w_fin_ref, b_fin_ref, out_ref):
        # Stage the (already bf16 / channel-padded) input strip into the interior.
        act_ref[1:S_ext + 1, 1:W + 1, :] = x_ref[0]
        for l in range(NC):
            acc = conv3x3(0, S_ext, lambda t, l=l: w_sub_ref[l, t])
            y = jnp.maximum(acc + b_sub_ref[l], 0.0)              # bias + ReLU in f32
            y3 = jnp.where(in_image, y.reshape(S_ext, W, Cp), 0.0)
            act_ref[1:S_ext + 1, 1:W + 1, :] = y3.astype(jnp.bfloat16)
        # Prediction conv: only the S clean rows of this strip, its own output width.
        acc = conv3x3(E, S, lambda t: w_fin_ref[t])
        out_ref[0] = acc + b_fin_ref[...]

    run_branch(wsc_ref, bsc_ref, wfc_ref, bfc_ref, cls_ref)
    run_branch(wsb_ref, bsb_ref, wfb_ref, bfb_ref, box_ref)


def _pick_strip(H, strip_rows):
    """Largest divisor of H that is <= strip_rows (fall back to whole image)."""
    S = H
    for cand in range(min(strip_rows, H), 0, -1):
        if H % cand == 0:
            S = cand
            break
    if S < min(8, H):
        # TODO(synk): ragged last strip (pl.BoundedSlice) for awkward/prime H.
        S = H
    return S


def fused_level_head(x, packed, strip_rows=8, vmem_limit_bytes=None):
    """Run both RetinaHead branches for one pyramid level in a single pallas_call.

    x      : (N, H, W, Cin) float32 feature map
    packed : output of pack_head_params
    returns: (cls NHWC, bbox NHWC) float32
    """
    N, H, W, Cin = x.shape
    assert Cin == packed["in_channels"]
    Cp = packed["Cp"]
    NC = packed["num_convs"]
    E = NC + 1                                   # recompute halo = total #convs in chain
    Ccls_p = packed["w_fin_cls"].shape[-1]
    Cbox_p = packed["w_fin_box"].shape[-1]

    S = _pick_strip(H, strip_rows)
    ns = H // S
    S_ext = S + 2 * E
    # NOTE: for production levels pick S so S*W is a multiple of 256 (v6e/v7x MXU feed).

    # Pad channels to Cp, pad H by the halo, gather overlapping strips, cast to bf16
    # (the conv operand dtype) so strip DMA traffic is halved.
    xs = x.astype(jnp.bfloat16)
    if Cp != Cin:
        xs = jnp.pad(xs, ((0, 0), (0, 0), (0, 0), (0, Cp - Cin)))
    xs = jnp.pad(xs, ((0, 0), (E, E), (0, 0), (0, 0)))
    strips = jnp.stack([xs[:, i * S:i * S + S_ext] for i in range(ns)], axis=1)
    strips = strips.reshape(N * ns, S_ext, W, Cp)

    def const_spec(arr):
        nd = arr.ndim
        return pl.BlockSpec(arr.shape, lambda n, s: (0,) * nd)   # resident across grid

    kernel = functools.partial(_fused_level_head_kernel, S=S, S_ext=S_ext, W=W,
                               Cp=Cp, NC=NC, E=E, H=H)

    cp_kwargs = dict(dimension_semantics=("parallel", "parallel"))
    if vmem_limit_bytes is not None:
        # For production 256-channel levels raise the scoped VMEM limit here.
        cp_kwargs["vmem_limit_bytes"] = vmem_limit_bytes

    cls_out, box_out = pl.pallas_call(
        kernel,
        out_shape=(jax.ShapeDtypeStruct((N, H * W, Ccls_p), jnp.float32),
                   jax.ShapeDtypeStruct((N, H * W, Cbox_p), jnp.float32)),
        grid=(N, ns),
        in_specs=[
            pl.BlockSpec((1, S_ext, W, Cp), lambda n, s: (n * ns + s, 0, 0, 0)),
            # NOTE: at production sizes give these constant-index weight specs
            # pipeline_mode=pl.Buffered(1) (or a one-shot manual copy) so the dead
            # second pipeline buffer does not compete with the activation strip.
            const_spec(packed["w_sub_cls"]), const_spec(packed["b_sub_cls"]),
            const_spec(packed["w_fin_cls"]), const_spec(packed["b_fin_cls"]),
            const_spec(packed["w_sub_box"]), const_spec(packed["b_sub_box"]),
            const_spec(packed["w_fin_box"]), const_spec(packed["b_fin_box"]),
        ],
        out_specs=(pl.BlockSpec((1, S * W, Ccls_p), lambda n, s: (n, s, 0)),
                   pl.BlockSpec((1, S * W, Cbox_p), lambda n, s: (n, s, 0))),
        scratch_shapes=[pltpu.VMEM((S_ext + 2, W + 2, Cp), jnp.bfloat16)],
        compiler_params=pltpu.CompilerParams(**cp_kwargs),
    )(strips,
      packed["w_sub_cls"], packed["b_sub_cls"], packed["w_fin_cls"], packed["b_fin_cls"],
      packed["w_sub_box"], packed["b_sub_box"], packed["w_fin_box"], packed["b_fin_box"])

    cls = cls_out[:, :, :packed["cls_out"]].reshape(N, H, W, packed["cls_out"])
    box = box_out[:, :, :packed["box_out"]].reshape(N, H, W, packed["box_out"])
    return cls, box


# ----------------------------------------------------------------------------
# RetinaHead parameters: init (matches RetinaHead.__init__) + one-time packing
# ----------------------------------------------------------------------------
def init_head_params(key, in_channels, num_classes, num_convs, num_anchors,
                     prior_prob=0.01):
    keys = jax.random.split(key, 2 * num_convs + 2)
    ki = iter(keys)

    def conv_param(k, cin, cout, bias_value=0.0):
        w = jax.random.normal(k, (3, 3, cin, cout), jnp.float32) * 0.01
        b = jnp.full((cout,), bias_value, jnp.float32)
        return w, b

    cls_subnet = [conv_param(next(ki), in_channels, in_channels)
                  for _ in range(num_convs)]
    bbox_subnet = [conv_param(next(ki), in_channels, in_channels)
                   for _ in range(num_convs)]
    bias_value = -math.log((1.0 - prior_prob) / prior_prob)
    cls_score = conv_param(next(ki), in_channels, num_anchors * num_classes,
                           bias_value=bias_value)
    bbox_pred = conv_param(next(ki), in_channels, num_anchors * 4)
    return dict(cls_subnet=cls_subnet, bbox_subnet=bbox_subnet,
                cls_score=cls_score, bbox_pred=bbox_pred)


def pack_head_params(params, in_channels):
    """Pack HWIO conv weights into per-tap MXU matrices ONCE (hoisted out of forward)."""
    Cp = _round_up(in_channels, 128)
    assert len(params["cls_subnet"]) >= 1

    def pack_subnet(layers):
        ws, bs = [], []
        for (w, b) in layers:
            cin, cout = w.shape[2], w.shape[3]
            # Padded-channel invariant: intermediate convs must be square and their
            # pad bias zero so pad channels stay exactly 0 through ReLU.
            assert cin == in_channels and cout == in_channels, (
                "fused head requires subnet convs with cin == cout == in_channels")
            wp = jnp.zeros((3, 3, Cp, Cp), jnp.bfloat16)
            wp = wp.at[:, :, :cin, :cout].set(w.astype(jnp.bfloat16))
            ws.append(wp.reshape(9, Cp, Cp))
            bp = jnp.zeros((1, Cp), jnp.float32).at[0, :cout].set(b.astype(jnp.float32))
            bs.append(bp)
        return jnp.stack(ws), jnp.stack(bs)            # (NC,9,Cp,Cp), (NC,1,Cp)

    def pack_final(w, b):
        cin, cout = w.shape[2], w.shape[3]
        assert cin == in_channels
        cout_p = _round_up(cout, 128)                  # per-layer padding, NOT Cmax
        wp = jnp.zeros((3, 3, Cp, cout_p), jnp.bfloat16)
        wp = wp.at[:, :, :cin, :cout].set(w.astype(jnp.bfloat16))
        bp = jnp.zeros((1, cout_p), jnp.float32).at[0, :cout].set(b.astype(jnp.float32))
        return wp.reshape(9, Cp, cout_p), bp, cout

    w_sub_cls, b_sub_cls = pack_subnet(params["cls_subnet"])
    w_sub_box, b_sub_box = pack_subnet(params["bbox_subnet"])
    w_fin_cls, b_fin_cls, cls_out = pack_final(*params["cls_score"])
    w_fin_box, b_fin_box, box_out = pack_final(*params["bbox_pred"])
    # TODO(synk): on v7x consider fp8(e4m3) subnet weights (bf16 activations) for ~2x MXU.
    return dict(in_channels=in_channels, Cp=Cp, num_convs=len(params["cls_subnet"]),
                cls_out=cls_out, box_out=box_out,
                w_sub_cls=w_sub_cls, b_sub_cls=b_sub_cls,
                w_fin_cls=w_fin_cls, b_fin_cls=b_fin_cls,
                w_sub_box=w_sub_box, b_sub_box=b_sub_box,
                w_fin_box=w_fin_box, b_fin_box=b_fin_box)


def retina_head_forward(features, packed, strip_rows=8):
    logits, bbox_reg = [], []
    for feat in features:
        cls, box = fused_level_head(feat, packed, strip_rows=strip_rows)
        logits.append(cls)
        bbox_reg.append(box)
    return logits, bbox_reg


def permute_to_N_HWA_K(t_nhwc, K):
    """NHWC (N, H, W, A*K) -> (N, H*W*A, K); same ordering as the PyTorch
    permute_to_N_HWA_K applied to the equivalent NCHW tensor."""
    N = t_nhwc.shape[0]
    return t_nhwc.reshape(N, -1, K)


# pure-JAX reference for a fused branch (same bf16 operand / f32 accumulate numerics)
def _branch_ref(x, layers):
    h = x.astype(jnp.float32)
    L = len(layers)
    for i, (w, b) in enumerate(layers):
        y = jax.lax.conv_general_dilated(
            h.astype(jnp.bfloat16), w.astype(jnp.bfloat16),
            window_strides=(1, 1), padding="SAME",
            dimension_numbers=("NHWC", "HWIO", "NHWC"),
            preferred_element_type=jnp.float32)
        y = y + b.reshape(1, 1, 1, -1).astype(jnp.float32)
        h = jnp.maximum(y, 0.0) if i < L - 1 else y
    return h


# ----------------------------------------------------------------------------
if __name__ == "__main__":
    key = jax.random.PRNGKey(0)
    k_img, k_f0, k_f1, k_head = jax.random.split(key, 4)

    # synthetic config (small shapes)
    num_classes = 8
    num_convs = 2
    num_anchors = 3
    in_channels = 16

    # --- preprocess_image: (x - pixel_mean) / pixel_std  (Pallas kernel) ---
    N, H, W, C_img = 2, 16, 16, 3
    images = jax.random.uniform(k_img, (N, H, W, C_img), jnp.float32) * 255.0
    pixel_mean = jnp.array([103.530, 116.280, 123.675], jnp.float32)
    pixel_std = jnp.array([57.375, 57.120, 58.395], jnp.float32)
    images_norm = normalize_image(images, pixel_mean, pixel_std)

    # --- backbone ---
    # TODO(synk): backbone_builder(cfg) (ResNet/FPN) not translatable; synthesize
    # two pyramid levels of features instead.
    features = [
        jax.random.normal(k_f0, (N, 16, 16, in_channels), jnp.float32) * 0.1,
        jax.random.normal(k_f1, (N, 8, 8, in_channels), jnp.float32) * 0.1,
    ]

    # --- RetinaHead: pack weights once, then one fused Pallas kernel per level ---
    params = init_head_params(k_head, in_channels, num_classes, num_convs,
                              num_anchors, prior_prob=0.01)
    packed = pack_head_params(params, in_channels)

    logits, bbox_reg = retina_head_forward(features, packed, strip_rows=8)

    pred_logits = [permute_to_N_HWA_K(x, num_classes) for x in logits]
    pred_anchor_deltas = [permute_to_N_HWA_K(x, 4) for x in bbox_reg]

    # TODO(synk): anchor generation, anchor matching, sigmoid focal loss and
    # batched NMS inference are omitted (library/config dependent).

    # --- sanity checks vs pure-JAX references ---
    norm_ref = (images - pixel_mean.reshape(1, 1, 1, -1)) / pixel_std.reshape(1, 1, 1, -1)
    np.testing.assert_allclose(np.asarray(images_norm), np.asarray(norm_ref),
                               rtol=1e-5, atol=1e-4)

    cls_layers = list(params["cls_subnet"]) + [params["cls_score"]]
    box_layers = list(params["bbox_subnet"]) + [params["bbox_pred"]]
    for lvl, feat in enumerate(features):
        np.testing.assert_allclose(np.asarray(logits[lvl]),
                                   np.asarray(_branch_ref(feat, cls_layers)),
                                   rtol=2e-3, atol=1e-4)
        np.testing.assert_allclose(np.asarray(bbox_reg[lvl]),
                                   np.asarray(_branch_ref(feat, box_layers)),
                                   rtol=2e-3, atol=1e-4)

    # expected shapes: level 0 -> (N, 16*16*A, K), level 1 -> (N, 8*8*A, K)
    assert pred_logits[0].shape == (N, 16 * 16 * num_anchors, num_classes)
    assert pred_logits[1].shape == (N, 8 * 8 * num_anchors, num_classes)
    assert pred_anchor_deltas[0].shape == (N, 16 * 16 * num_anchors, 4)
    assert pred_anchor_deltas[1].shape == (N, 8 * 8 * num_anchors, 4)

    jax.block_until_ready((pred_logits, pred_anchor_deltas, images_norm))
    print("KERNEL_OK")
</pallas_src>

<mosaic_0001>
module attributes {stable_mosaic.version = 11 : i64} {
  func.func @_normalize_kernel(%arg0: i32, %arg1: memref<32x48xf32, #tpu.memory_space<vmem>>, %arg2: memref<1x48xf32, #tpu.memory_space<vmem>>, %arg3: memref<1x48xf32, #tpu.memory_space<vmem>>, %arg4: memref<32x48xf32, #tpu.memory_space<vmem>>) attributes {dimension_semantics = [#tpu.dimension_semantics<parallel>], iteration_bounds = array<i64: 1>, scalar_prefetch = 0 : i64, scratch_operands = 0 : i64, tpu.core_type = #tpu.core_type<tc>, window_params = [{transform_indices = @transform_0, window_bounds = array<i64: 32, 48>}, {pipeline_mode = #tpu.pipeline_mode<synchronous>, transform_indices = @transform_1, window_bounds = array<i64: 1, 48>}, {pipeline_mode = #tpu.pipeline_mode<synchronous>, transform_indices = @transform_2, window_bounds = array<i64: 1, 48>}, {transform_indices = @transform_3, window_bounds = array<i64: 32, 48>}]} {
    %c0 = arith.constant 0 : index
    %c0_0 = arith.constant 0 : index
    %0 = vector.load %arg1[%c0, %c0_0] : memref<32x48xf32, #tpu.memory_space<vmem>>, vector<32x48xf32>
    %c0_1 = arith.constant 0 : index
    %c0_2 = arith.constant 0 : index
    %1 = vector.load %arg2[%c0_1, %c0_2] : memref<1x48xf32, #tpu.memory_space<vmem>>, vector<1x48xf32>
    %2 = vector.broadcast %1 : vector<1x48xf32> to vector<32x48xf32>
    %3 = arith.subf %0, %2 : vector<32x48xf32>
    %c0_3 = arith.constant 0 : index
    %c0_4 = arith.constant 0 : index
    %4 = vector.load %arg3[%c0_3, %c0_4] : memref<1x48xf32, #tpu.memory_space<vmem>>, vector<1x48xf32>
    %5 = vector.broadcast %4 : vector<1x48xf32> to vector<32x48xf32>
    %6 = arith.mulf %3, %5 : vector<32x48xf32>
    %c0_5 = arith.constant 0 : index
    %c0_6 = arith.constant 0 : index
    %7 = vector.load %arg4[%c0_5, %c0_6] : memref<32x48xf32, #tpu.memory_space<vmem>>, vector<32x48xf32>
    tpu.vector_store %arg4[%c0_5, %c0_6], %6 {strides = array<i32>} : memref<32x48xf32, #tpu.memory_space<vmem>>, vector<32x48xf32>,
    return
  }
  func.func @transform_0(%arg0: i32) -> (i32, i32) {
    %c0_i32 = arith.constant 0 : i32
    %c0_i32_0 = arith.constant 0 : i32
    return %arg0, %c0_i32 : i32, i32
  }
  func.func @transform_1(%arg0: i32) -> (i32, i32) {
    %c0_i32 = arith.constant 0 : i32
    %c0_i32_0 = arith.constant 0 : i32
    %c0_i32_1 = arith.constant 0 : i32
    return %c0_i32, %c0_i32_0 : i32, i32
  }
  func.func @transform_2(%arg0: i32) -> (i32, i32) {
    %c0_i32 = arith.constant 0 : i32
    %c0_i32_0 = arith.constant 0 : i32
    %c0_i32_1 = arith.constant 0 : i32
    return %c0_i32, %c0_i32_0 : i32, i32
  }
  func.func @transform_3(%arg0: i32) -> (i32, i32) {
    %c0_i32 = arith.constant 0 : i32
    %c0_i32_0 = arith.constant 0 : i32
    return %arg0, %c0_i32 : i32, i32
  }
}

</mosaic_0001>

<bundles_post_ra>
// kernel: tpu_custom_call.1
= control target key start
LH: loop header
LB: loop body
LE: loop exit
PB: predicated region body
PF: predicated region fallthrough
CT: control target
= control target key end

     0   :  { %8 = vsyncpa [#allocation3], 0  ;;  %s169_s0 = inlined_call_operand.hbm [shape: f32[32,48], index: 0, kind: input, shape index: {}]   ;;  %s170_s1 = inlined_call_operand.vmem [shape: f32[1,48], index: 1, kind: input, shape index: {}]   ;;  %s171_s2 = inlined_call_operand.vmem [shape: f32[1,48], index: 2, kind: input, shape index: {}]   ;;  %s172_s3 = inlined_call_operand.hbm [shape: f32[32,48], index: 3, kind: output, shape index: {}]  }
   0x1   :  { %9 = vsyncpa [#allocation4], 0  ;;  %s127_s12 = smov [#allocation2]  }
   0x2   :  { %s15_s13 = sshll.u32 %s127_s12, 4  ;;  %s16_s13 = int_to_ptr.vmem [resolvable:$true] %s15_s13 }
   0x3   :  { %s91_s14 = scalar_lea.vmem %s16_s13, 512  ;;  %p96_p1 = scmp.lt.s32.totalorder %s16_s13, %s16_s13 }
   0x4   :  { %p92_p0 = scmp.ne.s32.totalorder %s16_s13, %s91_s14  ;;  %p97_p2 = scmp.lt.s32.totalorder %s91_s14, %s91_s14 }
   0x6   :  { %p98_p3 = por %p97_p2, %p96_p1 }
   0x8   :  { %p99_p4 = pnand %p98_p3, %p92_p0 }
   0xa   :  { %102 = shalt.err (!%p99_p4)
}
   0xb   :  { %s128_s15 = smov 128   ;;  %s129_s16 = smov 8  }
   0xc   :  { %21 = dma.hbm_to_vmem [thread:$0]  %s169_s0, 512, %s16_s13, [#allocation3], %s128_s15, %s128_s15, %s129_s16  }
   0xd   :  { %123 = dma.done.wait [#allocation3], 512  }
   0xe   :  { %124 = vsyncadd [#allocation3], 4294966784  ;;  %v29_v0 = vld [vmem:[#allocation2] sm:$0xff]  ;;  %v30_v4 = vld [vmem:[#allocation2 + $0x8] sm:$0xff]  ;;  %s130_s23 = smov [#allocation5]   ;;  %vm55_vm0 = vcmask 392192  }
   0xf   :  { %v77_v1 = vld [vmem:[%s170_s1] ss:$0 sm:$0xff]  ;;  %v31_v5 = vld [vmem:[#allocation2 + $0x10] sm:$0xff]  ;;  %v32_v6 = vld [vmem:[#allocation2 + $0x18] sm:$0xff]  ;;  %s65_s24 = sshll.u32 %s130_s23, 4  ;;  %s66_s24 = int_to_ptr.vmem [resolvable:$true] %s65_s24 }
  0x10   :  { %v78_v2 = vld [vmem:[%s171_s2] ss:$0 sm:$0xff]  ;;  %v40_v3 = vsub.f32 %v29_v0, %v77_v1  ;;  %v41_v7 = vsub.f32 %v30_v4, %v77_v1  ;;  %v42_v8 = vsub.f32 %v31_v5, %v77_v1  ;;  %v43_v9 = vsub.f32 %v32_v6, %v77_v1  ;;  %s103_s0 = scalar_lea.vmem %s66_s24, 512  ;;  %p108_p6 = scmp.lt.s32.totalorder %s66_s24, %s66_s24 }
  0x11   :  { %p104_p5 = scmp.ne.s32.totalorder %s66_s24, %s103_s0  ;;  %p109_p7 = scmp.lt.s32.totalorder %s103_s0, %s103_s0 }
  0x12   :  { %v51_v10 = vmul.f32 %v78_v2, %v40_v3  ;;  %v52_v11 = vmul.f32 %v78_v2, %v41_v7  ;;  %v53_v12 = vmul.f32 %v78_v2, %v42_v8  ;;  %v54_v13 = vmul.f32 %v78_v2, %v43_v9 }
  0x13   :  { %p110_p8 = por %p109_p7, %p108_p6 }
  0x14   :  { %56 = vst.msk [vmem:[#allocation5] sm:$0xff] %vm55_vm0, %v51_v10  ;;  %57 = vst.msk [vmem:[#allocation5 + $0x8] sm:$0xff] %vm55_vm0, %v52_v11 }
  0x15   :  { %58 = vst.msk [vmem:[#allocation5 + $0x10] sm:$0xff] %vm55_vm0, %v53_v12  ;;  %59 = vst.msk [vmem:[#allocation5 + $0x18] sm:$0xff] %vm55_vm0, %v54_v13  ;;  %p111_p9 = pnand %p110_p8, %p104_p5 }
  0x17   :  { %114 = shalt.err (!%p111_p9)
}
  0x18   :  { %71 = dma.vmem_to_hbm [thread:$0]  %s66_s24, 512, %s172_s3, [#allocation4], %s128_s15, %s128_s15, %s129_s16  }
  0x19   :  { %125 = dma.done.wait [#allocation4], 512  }
  0x1a   :  { %126 = vsyncadd [#allocation4], 4294966784 }
  0x1b   :  { %75 = vsyncpa [#allocation3], 1 }
  0x1c   :  { %76 = vsyncpa [#allocation4], 1 }

</bundles_post_ra>
